<compile_context>
chip_gen: v6e
topology: v6e:2x2x1
jax: 0.10.0
libtpu: 0.0.40
codegen_flags: <defaults>
</compile_context>

<pallas_src>
import functools
import math

import jax
import jax.numpy as jnp
from jax import lax
from jax.experimental import pallas as pl
from jax.experimental.pallas import tpu as pltpu


def _round_up(x, m):
    return ((x + m - 1) // m) * m


def _choose_pack(Wg, Hg):
    """Rows packed per lane row so that lanes are not mostly padding."""
    if Wg % 128 == 0:
        return 1
    cands = {1}
    if Wg < 128:
        cands.add(max(1, 128 // Wg))
    r_exact = 128 // math.gcd(Wg, 128)
    if r_exact * Wg <= 2048:
        cands.add(r_exact)

    def padded_pixels(r):
        rows = _round_up(max(1, -(-Hg // r)), 8)
        width = _round_up(r * Wg, 128)
        return rows * width

    return min(cands, key=padded_pixels)


def _bp_kernel(sino_ref, gsq_ref, out_ref, *, x_on_mxu, d_real, v_real):
    # sino_ref: (1, C*N, K)  bf16   (K = MXU contraction axis = larger of {V,D})
    # gsq_ref:  (1, 3, TH, TW) f32  (gx, gy, square_inv planes; lane-dense)
    # out_ref:  (1, C, TW)   f32    (resident accumulator across the h axis)
    _, CN, K = sino_ref.shape
    _, _, TH, TW = gsq_ref.shape
    C = out_ref.shape[1]
    N = CN // C
    P = TH * TW

    g = gsq_ref[0]                        # (3, TH, TW)
    # Only these three small planes are relayouted to the flat lane axis.
    gx = g[0].reshape(1, P)
    gy = g[1].reshape(1, P)
    sq = g[2].reshape(1, P)

    # grid_sample coordinate math (align_corners=False, padding_mode='border').
    ix = jnp.clip((gx + 1.0) * (0.5 * d_real) - 0.5, 0.0, float(d_real - 1))
    iy = jnp.clip((gy + 1.0) * (0.5 * v_real) - 0.5, 0.0, float(v_real - 1))
    if x_on_mxu:                          # detector axis on the MXU contraction
        ck, cn = ix, iy
    else:                                 # view axis on the MXU contraction
        ck, cn = iy, ix

    # Tent weights == bilinear weights with border clamping (exact for clipped
    # coordinates); no int math, no one-hot compares.
    k_pos = lax.broadcasted_iota(jnp.int32, (K, P), 0).astype(jnp.float32)
    n_pos = lax.broadcasted_iota(jnp.int32, (N, P), 0).astype(jnp.float32)
    wk = jnp.maximum(1.0 - jnp.abs(k_pos - ck), 0.0)          # (K, P) f32
    wn = jnp.maximum(1.0 - jnp.abs(n_pos - cn), 0.0)          # (N, P) f32

    # Big axis on the MXU: single-pass bf16 contraction, f32 accumulation.
    inner = jnp.dot(sino_ref[0], wk.astype(jnp.bfloat16),
                    preferred_element_type=jnp.float32)        # (C*N, P)

    # Short-axis 2-tap interpolation on the VPU. (C*N,P)->(C,N,P) splits a
    # leading dim only (N is padded to a multiple of 8) -> layout preserving.
    samp = jnp.sum(inner.reshape(C, N, P) * wn[None, :, :], axis=1)  # (C, P)
    samp = samp * (sq * 1000.0)                                 # fold sq*1000

    # Partial sum over the grid-row (dim=-2) axis: TH lane groups of width TW
    # (TW % 128 == 0) folded with lane-tile-aligned slices, tree-reduced.
    parts = [samp[:, h * TW:(h + 1) * TW] for h in range(TH)]
    while len(parts) > 1:
        nxt = [parts[i] + parts[i + 1] for i in range(0, len(parts) - 1, 2)]
        if len(parts) % 2 == 1:
            nxt.append(parts[-1])
        parts = nxt
    tile = parts[0]                                             # (C, TW)

    @pl.when(pl.program_id(2) == 0)
    def _():
        out_ref[...] = jnp.zeros_like(out_ref)
    out_ref[...] += tile[None, :, :]


def back_projection(sinogram, grid, square_inv, *, tile_rows=None, tile_w=None):
    """Pallas implementation of IMGSR.back_projection.

    sinogram:   (B, C, V, D) ;  grid: (B, Hg, Wg, 2) in [-1, 1]
    square_inv: (B, 1, Hg, Wg) ;  returns (B, C, Wg) float32
    """
    B, C, V, D = sinogram.shape
    _, Hg, Wg, _ = grid.shape

    # Larger of {view, det} goes on the MXU contraction axis (last dim).
    x_on_mxu = D >= V
    if x_on_mxu:
        N, K = V, D
        sino = sinogram.astype(jnp.float32)                        # (B,C,V,D)
    else:
        N, K = D, V
        sino = jnp.swapaxes(sinogram.astype(jnp.float32), -1, -2)  # (B,C,D,V)

    N_pad = _round_up(N, 8)
    K_pad = _round_up(K, 8)
    sino = jnp.pad(sino, ((0, 0), (0, 0), (0, N_pad - N), (0, K_pad - K)))
    # bf16 storage: halves the (double-buffered) sinogram block and feeds the
    # MXU a single-pass bf16 matmul.
    sino = sino.reshape(B, C * N_pad, K_pad).astype(jnp.bfloat16)

    # ---- row packing + lane-dense width ----
    r = _choose_pack(Wg, Hg)
    pw = r * Wg
    WGP = _round_up(pw, 128)

    if tile_w is not None:
        tw = int(tile_w)
        assert tw % 128 == 0 and WGP % tw == 0
    else:
        tw = 128
        for cand in (512, 384, 256, 128):
            if cand <= WGP and WGP % cand == 0:
                tw = cand
                break
    n_w = WGP // tw

    # ---- generation-aware VMEM budgeting (full accounting) ----
    try:
        phys_vmem = pltpu.get_tpu_info().vmem_capacity_bytes
    except Exception:
        phys_vmem = 64 * 1024 * 1024
    vmem_limit = int(min(phys_vmem * 3 // 4, 100 * 1024 * 1024))
    budget = vmem_limit - (2 << 20)

    CN = C * N_pad
    # bytes per grid-row of the tile (width tw):
    per_row = tw * (2 * 3 * 4          # double-buffered gsq block
                    + 10 * 4           # coordinate / flattening temporaries
                    + 6 * K_pad        # wk f32 + bf16 copy
                    + 6 * N_pad        # wn f32 + broadcast temp
                    + 8 * CN           # inner + (inner*wn) f32 temporaries
                    + 8 * C)           # samp / fold temporaries
    fixed = 2 * CN * K_pad * 2 + 2 * C * tw * 4 + (1 << 20)
    # TODO(synk): for very large sinograms the resident (double-buffered)
    # sinogram block can exceed VMEM on v7x; tile N or K with accumulation.

    rows0 = max(1, -(-Hg // r))        # packed grid rows actually needed
    if tile_rows is not None:
        th = max(8, (int(tile_rows) // 8) * 8)
    else:
        if budget > fixed + 8 * per_row:
            th = max(8, ((budget - fixed) // per_row) // 8 * 8)
        else:
            th = 8
        th = min(th, 512)
    th = min(th, _round_up(rows0, 8))
    HROWS = _round_up(rows0, th)
    n_h = HROWS // th

    # ---- one stacked, packed, padded (gx, gy, square_inv) tensor ----
    gx = grid[..., 0].astype(jnp.float32)
    gy = grid[..., 1].astype(jnp.float32)
    sq = jnp.broadcast_to(square_inv.astype(jnp.float32),
                          (B, 1, Hg, Wg)).reshape(B, Hg, Wg)
    gsq = jnp.stack([gx, gy, sq], axis=1)                       # (B,3,Hg,Wg)
    Hg_r = _round_up(Hg, r)
    gsq = jnp.pad(gsq, ((0, 0), (0, 0), (0, Hg_r - Hg), (0, 0)))
    gsq = gsq.reshape(B, 3, Hg_r // r, pw)
    gsq = jnp.pad(gsq, ((0, 0), (0, 0),
                        (0, HROWS - Hg_r // r), (0, WGP - pw)))
    # zero square_inv on all padded pixels -> zero contribution.

    kernel = functools.partial(_bp_kernel, x_on_mxu=x_on_mxu,
                               d_real=D, v_real=V)

    flops = 2.0 * B * CN * K_pad * HROWS * WGP + 4.0 * B * CN * HROWS * WGP
    bytes_acc = (2.0 * B * CN * K_pad + 4.0 * B * 3 * HROWS * WGP
                 + 4.0 * B * C * WGP)

    out = pl.pallas_call(
        kernel,
        out_shape=jax.ShapeDtypeStruct((B, C, WGP), jnp.float32),
        grid_spec=pltpu.PrefetchScalarGridSpec(
            num_scalar_prefetch=0,
            grid=(B, n_w, n_h),
            in_specs=[
                # Sinogram block index constant over (w, h): one fetch/batch.
                pl.BlockSpec((1, CN, K_pad), lambda b, w, h: (b, 0, 0)),
                pl.BlockSpec((1, 3, th, tw), lambda b, w, h: (b, 0, h, w)),
            ],
            # Same output block for every h step -> VMEM-resident accumulator.
            out_specs=pl.BlockSpec((1, C, tw), lambda b, w, h: (b, 0, w)),
        ),
        compiler_params=pltpu.CompilerParams(
            dimension_semantics=("parallel", "parallel", "arbitrary"),
            vmem_limit_bytes=vmem_limit,
        ),
        cost_estimate=pl.CostEstimate(flops=int(flops), transcendentals=0,
                                      bytes_accessed=int(bytes_acc)),
    )(sino, gsq)

    # Fold the r packed row groups (still part of the dim=-2 sum) and drop the
    # lane padding.
    out = out[:, :, :pw].reshape(B, C, r, Wg).sum(axis=2)
    return out


@functools.partial(jax.jit, static_argnames=("train", "tile_rows", "tile_w"))
def imgsr_forward(sinogram, grid, square_inv, cell, scale, train=False,
                  tile_rows=None, tile_w=None):
    """Mirrors IMGSR.forward(sinogram, grid, square_inv, cell, scale, train)."""
    del cell, scale, train  # unused by the back-projection
    recon_feat = back_projection(sinogram, grid, square_inv,
                                 tile_rows=tile_rows, tile_w=tile_w)
    # TODO(synk): self.restorator is dynamically imported (model.<name>) and its
    # architecture is not defined in this file; treated as identity here.
    return recon_feat


# ---------------------------------------------------------------------------
# pure-JAX reference (gather-based grid_sample, bilinear / border / no-align)
# ---------------------------------------------------------------------------
def _ref_back_projection(sino, grid, square_inv):
    B, C, V, D = sino.shape
    gx, gy = grid[..., 0], grid[..., 1]
    ix = jnp.clip((gx + 1.0) * (D * 0.5) - 0.5, 0.0, D - 1.0)
    iy = jnp.clip((gy + 1.0) * (V * 0.5) - 0.5, 0.0, V - 1.0)
    x0 = jnp.floor(ix).astype(jnp.int32)
    y0 = jnp.floor(iy).astype(jnp.int32)
    x1 = jnp.minimum(x0 + 1, D - 1)
    y1 = jnp.minimum(y0 + 1, V - 1)
    wx = ix - jnp.floor(ix)
    wy = iy - jnp.floor(iy)
    outs = []
    for b in range(B):
        s = sino[b]
        v00 = s[:, y0[b], x0[b]]
        v01 = s[:, y0[b], x1[b]]
        v10 = s[:, y1[b], x0[b]]
        v11 = s[:, y1[b], x1[b]]
        samp = (v00 * (1 - wy[b]) * (1 - wx[b]) + v01 * (1 - wy[b]) * wx[b]
                + v10 * wy[b] * (1 - wx[b]) + v11 * wy[b] * wx[b])
        outs.append(jnp.sum(samp * square_inv[b] * 1000.0, axis=-2))
    return jnp.stack(outs)


def _run_case(key, B, C, V, D, Hg, Wg, tile_rows=None, tile_w=None):
    k1, k2, k3, k4, k5 = jax.random.split(key, 5)
    sinogram = jax.random.normal(k1, (B, C, V, D), dtype=jnp.float32)
    grid = jax.random.uniform(k2, (B, Hg, Wg, 2), dtype=jnp.float32,
                              minval=-1.0, maxval=1.0)
    square_inv = jax.random.uniform(k3, (B, 1, Hg, Wg), dtype=jnp.float32) * 1e-3
    cell = jax.random.uniform(k4, (B, Hg * Wg, 2), dtype=jnp.float32)
    scale = jax.random.uniform(k5, (B, 1), dtype=jnp.float32,
                               minval=1.0, maxval=4.0)

    out = imgsr_forward(sinogram, grid, square_inv, cell, scale,
                        train=False, tile_rows=tile_rows, tile_w=tile_w)
    out = jax.block_until_ready(out)

    ref = _ref_back_projection(sinogram, grid, square_inv)
    assert out.shape == (B, C, Wg), out.shape
    err = float(jnp.max(jnp.abs(out - ref)))
    # bf16 single-pass MXU contraction -> relaxed (but still tight) tolerance.
    assert jnp.allclose(out, ref, rtol=2e-2, atol=5e-2), err
    return err


if __name__ == "__main__":
    key = jax.random.PRNGKey(0)
    ka, kb, kc = jax.random.split(key, 3)

    # Case 1: detector axis on the MXU; Wg=16 -> 8 grid rows packed per lane row.
    _run_case(ka, B=2, C=4, V=16, D=16, Hg=16, Wg=16)

    # Case 2: view axis larger -> views on the MXU contraction; ragged Hg/Wg
    # exercise packed-row and lane padding.
    _run_case(kb, B=1, C=3, V=24, D=8, Hg=12, Wg=20)

    # Case 3: B=1 with forced row/width tiles -> exercises the cross-h-step
    # output accumulation AND the parallel width-tile axis (n_h=3, n_w=2).
    _run_case(kc, B=1, C=3, V=12, D=20, Hg=24, Wg=256, tile_rows=8, tile_w=128)

    print("KERNEL_OK")
</pallas_src>

<mosaic_0001>
module attributes {stable_mosaic.version = 11 : i64} {
  func.func @_bp_kernel(%arg0: i32, %arg1: i32, %arg2: i32, %arg3: memref<1x64x16xbf16, #tpu.memory_space<vmem>>, %arg4: memref<1x3x8x128xf32, #tpu.memory_space<vmem>>, %arg5: memref<1x4x128xf32, #tpu.memory_space<vmem>>) attributes {dimension_semantics = [#tpu.dimension_semantics<parallel>, #tpu.dimension_semantics<parallel>, #tpu.dimension_semantics<arbitrary>], iteration_bounds = array<i64: 2, 1, 1>, scalar_prefetch = 0 : i64, scratch_operands = 0 : i64, tpu.core_type = #tpu.core_type<tc>, window_params = [{transform_indices = @transform_0, window_bounds = array<i64: 1, 64, 16>}, {transform_indices = @transform_1, window_bounds = array<i64: 1, 3, 8, 128>}, {transform_indices = @transform_2, window_bounds = array<i64: 1, 4, 128>}]} {
    %c0 = arith.constant 0 : index
    %c0_0 = arith.constant 0 : index
    %c0_1 = arith.constant 0 : index
    %c0_2 = arith.constant 0 : index
    %0 = vector.load %arg4[%c0, %c0_0, %c0_1, %c0_2] : memref<1x3x8x128xf32, #tpu.memory_space<vmem>>, vector<1x3x8x128xf32>
    %1 = vector.shape_cast %0 : vector<1x3x8x128xf32> to vector<3x8x128xf32>
    %2 = vector.extract_strided_slice %1 {offsets = [0, 0, 0], sizes = [1, 8, 128], strides = [1, 1, 1]} : vector<3x8x128xf32> to vector<1x8x128xf32>
    %3 = vector.shape_cast %2 : vector<1x8x128xf32> to vector<8x128xf32>
    %4 = vector.shape_cast %3 : vector<8x128xf32> to vector<1x1024xf32>
    %5 = vector.extract_strided_slice %1 {offsets = [1, 0, 0], sizes = [1, 8, 128], strides = [1, 1, 1]} : vector<3x8x128xf32> to vector<1x8x128xf32>
    %6 = vector.shape_cast %5 : vector<1x8x128xf32> to vector<8x128xf32>
    %7 = vector.shape_cast %6 : vector<8x128xf32> to vector<1x1024xf32>
    %8 = vector.extract_strided_slice %1 {offsets = [2, 0, 0], sizes = [1, 8, 128], strides = [1, 1, 1]} : vector<3x8x128xf32> to vector<1x8x128xf32>
    %9 = vector.shape_cast %8 : vector<1x8x128xf32> to vector<8x128xf32>
    %10 = vector.shape_cast %9 : vector<8x128xf32> to vector<1x1024xf32>
    %cst = arith.constant 1.000000e+00 : f32
    %11 = vector.broadcast %cst : f32 to vector<1x1024xf32>
    %12 = arith.addf %4, %11 : vector<1x1024xf32>
    %cst_3 = arith.constant 8.000000e+00 : f32
    %13 = vector.broadcast %cst_3 : f32 to vector<1x1024xf32>
    %14 = arith.mulf %12, %13 : vector<1x1024xf32>
    %cst_4 = arith.constant 5.000000e-01 : f32
    %15 = vector.broadcast %cst_4 : f32 to vector<1x1024xf32>
    %16 = arith.subf %14, %15 : vector<1x1024xf32>
    %cst_5 = arith.constant 0.000000e+00 : f32
    %cst_6 = arith.constant 1.500000e+01 : f32
    %17 = vector.broadcast %cst_5 : f32 to vector<1x1024xf32>
    %18 = arith.maximumf %17, %16 : vector<1x1024xf32>
    %19 = vector.broadcast %cst_6 : f32 to vector<1x1024xf32>
    %20 = arith.minimumf %19, %18 : vector<1x1024xf32>
    %cst_7 = arith.constant 1.000000e+00 : f32
    %21 = vector.broadcast %cst_7 : f32 to vector<1x1024xf32>
    %22 = arith.addf %7, %21 : vector<1x1024xf32>
    %cst_8 = arith.constant 8.000000e+00 : f32
    %23 = vector.broadcast %cst_8 : f32 to vector<1x1024xf32>
    %24 = arith.mulf %22, %23 : vector<1x1024xf32>
    %cst_9 = arith.constant 5.000000e-01 : f32
    %25 = vector.broadcast %cst_9 : f32 to vector<1x1024xf32>
    %26 = arith.subf %24, %25 : vector<1x1024xf32>
    %cst_10 = arith.constant 0.000000e+00 : f32
    %cst_11 = arith.constant 1.500000e+01 : f32
    %27 = vector.broadcast %cst_10 : f32 to vector<1x1024xf32>
    %28 = arith.maximumf %27, %26 : vector<1x1024xf32>
    %29 = vector.broadcast %cst_11 : f32 to vector<1x1024xf32>
    %30 = arith.minimumf %29, %28 : vector<1x1024xf32>
    %31 = tpu.iota {dimensions = array<i32: 0>} : vector<16x1024xi32>
    %32 = arith.sitofp %31 : vector<16x1024xi32> to vector<16x1024xf32>
    %33 = tpu.iota {dimensions = array<i32: 0>} : vector<16x1024xi32>
    %34 = arith.sitofp %33 : vector<16x1024xi32> to vector<16x1024xf32>
    %35 = vector.broadcast %20 : vector<1x1024xf32> to vector<16x1024xf32>
    %36 = arith.subf %32, %35 : vector<16x1024xf32>
    %37 = math.absf %36 : vector<16x1024xf32>
    %cst_12 = arith.constant 1.000000e+00 : f32
    %38 = vector.broadcast %cst_12 : f32 to vector<16x1024xf32>
    %39 = arith.subf %38, %37 : vector<16x1024xf32>
    %cst_13 = arith.constant 0.000000e+00 : f32
    %40 = vector.broadcast %cst_13 : f32 to vector<16x1024xf32>
    %41 = arith.maximumf %39, %40 : vector<16x1024xf32>
    %42 = vector.broadcast %30 : vector<1x1024xf32> to vector<16x1024xf32>
    %43 = arith.subf %34, %42 : vector<16x1024xf32>
    %44 = math.absf %43 : vector<16x1024xf32>
    %cst_14 = arith.constant 1.000000e+00 : f32
    %45 = vector.broadcast %cst_14 : f32 to vector<16x1024xf32>
    %46 = arith.subf %45, %44 : vector<16x1024xf32>
    %cst_15 = arith.constant 0.000000e+00 : f32
    %47 = vector.broadcast %cst_15 : f32 to vector<16x1024xf32>
    %48 = arith.maximumf %46, %47 : vector<16x1024xf32>
    %c0_16 = arith.constant 0 : index
    %c0_17 = arith.constant 0 : index
    %c0_18 = arith.constant 0 : index
    %49 = vector.load %arg3[%c0_16, %c0_17, %c0_18] : memref<1x64x16xbf16, #tpu.memory_space<vmem>>, vector<1x64x16xbf16>
    %50 = vector.shape_cast %49 : vector<1x64x16xbf16> to vector<64x16xbf16>
    %51 = arith.truncf %41 : vector<16x1024xf32> to vector<16x1024xbf16>
    %cst_19 = arith.constant dense<0.000000e+00> : vector<64x1024xf32>
    %52 = tpu.matmul %50, %51, %cst_19 {dimension_numbers = #tpu.dot_dimension_numbers<[1], [0], [0], [1], [0, 0, 1, 1], [], []>} : vector<64x16xbf16>, vector<16x1024xbf16>, vector<64x1024xf32> -> vector<64x1024xf32>
    %53 = vector.shape_cast %52 : vector<64x1024xf32> to vector<4x16x1024xf32>
    %54 = vector.shape_cast %48 : vector<16x1024xf32> to vector<1x16x1024xf32>
    %55 = vector.broadcast %54 : vector<1x16x1024xf32> to vector<4x16x1024xf32>
    %56 = arith.mulf %53, %55 : vector<4x16x1024xf32>
    %cst_20 = arith.constant dense<0.000000e+00> : vector<4x1024xf32>
    %57 = vector.multi_reduction <add>, %56, %cst_20 [1] : vector<4x16x1024xf32> to vector<4x1024xf32>
    %cst_21 = arith.constant 1.000000e+03 : f32
    %58 = vector.broadcast %cst_21 : f32 to vector<1x1024xf32>
    %59 = arith.mulf %10, %58 : vector<1x1024xf32>
    %60 = vector.broadcast %59 : vector<1x1024xf32> to vector<4x1024xf32>
    %61 = arith.mulf %57, %60 : vector<4x1024xf32>
    %62 = vector.extract_strided_slice %61 {offsets = [0, 0], sizes = [4, 128], strides = [1, 1]} : vector<4x1024xf32> to vector<4x128xf32>
    %63 = vector.extract_strided_slice %61 {offsets = [0, 128], sizes = [4, 128], strides = [1, 1]} : vector<4x1024xf32> to vector<4x128xf32>
    %64 = vector.extract_strided_slice %61 {offsets = [0, 256], sizes = [4, 128], strides = [1, 1]} : vector<4x1024xf32> to vector<4x128xf32>
    %65 = vector.extract_strided_slice %61 {offsets = [0, 384], sizes = [4, 128], strides = [1, 1]} : vector<4x1024xf32> to vector<4x128xf32>
    %66 = vector.extract_strided_slice %61 {offsets = [0, 512], sizes = [4, 128], strides = [1, 1]} : vector<4x1024xf32> to vector<4x128xf32>
    %67 = vector.extract_strided_slice %61 {offsets = [0, 640], sizes = [4, 128], strides = [1, 1]} : vector<4x1024xf32> to vector<4x128xf32>
    %68 = vector.extract_strided_slice %61 {offsets = [0, 768], sizes = [4, 128], strides = [1, 1]} : vector<4x1024xf32> to vector<4x128xf32>
    %69 = vector.extract_strided_slice %61 {offsets = [0, 896], sizes = [4, 128], strides = [1, 1]} : vector<4x1024xf32> to vector<4x128xf32>
    %70 = arith.addf %62, %63 : vector<4x128xf32>
    %71 = arith.addf %64, %65 : vector<4x128xf32>
    %72 = arith.addf %66, %67 : vector<4x128xf32>
    %73 = arith.addf %68, %69 : vector<4x128xf32>
    %74 = arith.addf %70, %71 : vector<4x128xf32>
    %75 = arith.addf %72, %73 : vector<4x128xf32>
    %76 = arith.addf %74, %75 : vector<4x128xf32>
    %c0_i32 = arith.constant 0 : i32
    %77 = arith.cmpi eq, %arg2, %c0_i32 : i32
    %78 = arith.extui %77 : i1 to i32
    %c0_i32_22 = arith.constant 0 : i32
    %79 = arith.cmpi ne, %78, %c0_i32_22 : i32
    scf.if %79 {
      %cst_29 = arith.constant 0.000000e+00 : f32
      %84 = vector.broadcast %cst_29 : f32 to vector<1x4x128xf32>
      %c0_30 = arith.constant 0 : index
      %c0_31 = arith.constant 0 : index
      %c0_32 = arith.constant 0 : index
      %85 = vector.load %arg5[%c0_30, %c0_31, %c0_32] : memref<1x4x128xf32, #tpu.memory_space<vmem>>, vector<1x4x128xf32>
      tpu.vector_store %arg5[%c0_30, %c0_31, %c0_32], %84 {strides = array<i32>} : memref<1x4x128xf32, #tpu.memory_space<vmem>>, vector<1x4x128xf32>,
    } else {
    }
    %c0_23 = arith.constant 0 : index
    %c0_24 = arith.constant 0 : index
    %c0_25 = arith.constant 0 : index
    %80 = vector.load %arg5[%c0_23, %c0_24, %c0_25] : memref<1x4x128xf32, #tpu.memory_space<vmem>>, vector<1x4x128xf32>
    %81 = vector.shape_cast %76 : vector<4x128xf32> to vector<1x4x128xf32>
    %82 = arith.addf %80, %81 : vector<1x4x128xf32>
    %c0_26 = arith.constant 0 : index
    %c0_27 = arith.constant 0 : index
    %c0_28 = arith.constant 0 : index
    %83 = vector.load %arg5[%c0_26, %c0_27, %c0_28] : memref<1x4x128xf32, #tpu.memory_space<vmem>>, vector<1x4x128xf32>
    tpu.vector_store %arg5[%c0_26, %c0_27, %c0_28], %82 {strides = array<i32>} : memref<1x4x128xf32, #tpu.memory_space<vmem>>, vector<1x4x128xf32>,
    return
  }
  func.func @transform_0(%arg0: i32, %arg1: i32, %arg2: i32) -> (i32, i32, i32) {
    %c0_i32 = arith.constant 0 : i32
    %c0_i32_0 = arith.constant 0 : i32
    %c0_i32_1 = arith.constant 0 : i32
    return %arg0, %c0_i32, %c0_i32_0 : i32, i32, i32
  }
  func.func @transform_1(%arg0: i32, %arg1: i32, %arg2: i32) -> (i32, i32, i32, i32) {
    %c0_i32 = arith.constant 0 : i32
    %c0_i32_0 = arith.constant 0 : i32
    return %arg0, %c0_i32, %arg2, %arg1 : i32, i32, i32, i32
  }
  func.func @transform_2(%arg0: i32, %arg1: i32, %arg2: i32) -> (i32, i32, i32) {
    %c0_i32 = arith.constant 0 : i32
    %c0_i32_0 = arith.constant 0 : i32
    return %arg0, %c0_i32, %arg1 : i32, i32, i32
  }
}

</mosaic_0001>

<bundles_post_ra>
// kernel: imgsr_forward.1
= control target key start
LH: loop header
LB: loop body
LE: loop exit
PB: predicated region body
PF: predicated region fallthrough
CT: control target
= control target key end

     0   :  { %s1394_s9 = smov 0   ;;  %s1396_s10 = smov 0   ;;  %s1770_s0 = inlined_call_operand.vmem [shape: bf16[2,64,16], index: 0, kind: input, shape index: {}]   ;;  %s1771_s1 = inlined_call_operand.vmem [shape: f32[2,3,8,128], index: 1, kind: input, shape index: {}]   ;;  %s1772_s2 = inlined_call_operand.vmem [shape: f32[2,4,128], index: 2, kind: output, shape index: {}]  }
   0x1   :  { %s1398_s11 = smov 0  }
   0x2 LB: > { %s31_s12 = sadd.s32 1, %s1371_s10  ;;  %p1292_p0 = scmp.ge.s32.totalorder %s1375_s11, 1  ;;  %s1375_s11 = sphi %s1398_s11, %s12_s11   ;;  %s1371_s10 = sphi %s1396_s10, %s1774_s10   ;;  %s1367_s9 = sphi %s1394_s9, %s1773_s9  }
   0x3   : > { %p33_p1 = scmp.ge.s32.totalorder %s31_s12, 2  ;;  %p153_p2 = scmp.lt.s32.totalorder %s1375_s11, 3 }
   0x5   : > { %s1776_s12 = smov (%p33_p1, %s31_s12), 0  ;;  %p154_p3 = pnand %p1292_p0, %p153_p2 }
   0x6   : > { %p188_p4 = scmp.lt.s32.totalorder (!%p154_p3), %s1367_s9, 1 }
   0x7   : > { %157 = sbr.rel (%p154_p3) target bundleno = 352 (0x160), region = 28 }
   0xc   : > { %v225_v0 = vlaneseq  ;;  %v1377_v1 = vmov 0   ;;  %s1778_s9 = smov (!%p188_p4, %s1367_s9), 1  ;;  %vm476_vm0 = vcmask 130048   ;;  %vm1182_vm1 = vcmask 1041409  }
   0xd   : > { %521 = vmatprep.mubr.bf16.mxu0 %v1377_v1  ;;  %594 = vmatprep.mubr.bf16.mxu1 %v1377_v1  ;;  %s1322_s13 = smul.u32 24, %s1778_s9  ;;  %s1321_s14 = sshll.u32 %s1778_s9, 5  ;;  %vm1185_vm2 = vcmask 1042434   ;;  %vm1188_vm3 = vcmask 1043459  }
   0xe   : > { %v226_v2 = vshrl.u32 %v225_v0, 7  ;;  %s1421_s17 = scalar_lea.vmem %s1770_s0, %s1321_s14  ;;  %s1296_s21 = sshll.u32 %s1778_s9, 2 }
   0xf   : > { %s203_s20 = scalar_lea.vmem %s1771_s1, %s1322_s13  ;;  %s1533_s24 = scalar_lea.vmem %s1772_s2, %s1296_s21 }
  0x10   : > { %v212_v3 = vld [vmem:[%s203_s20] sm:$0xff]  ;;  %v214_v4 = vld [vmem:[%s203_s20 + $0x10] sm:$0xff]  ;;  %v1428_v7 = vsub.s32 0, %v226_v2  ;;  %v213_v10 = vld [vmem:[%s203_s20 + $0x8] sm:$0xff]  ;;  %v227_v13 = vadd.s32 8, %v226_v2  ;;  %v1434_v14 = vsub.s32 1, %v226_v2  ;;  %v1450_v25 = vcvt.s32.f32 %v226_v2 }
  0x11   : > { %v215_v5 = vadd.f32 1.0, %v212_v3  ;;  %v1426_v6 = vmul.f32 1000.0, %v214_v4  ;;  %v220_v11 = vadd.f32 1.0, %v213_v10  ;;  %v1436_v17 = vsub.s32 3, %v226_v2 }
  0x12   : > { %v1438_v18 = vsub.s32 2, %v226_v2  ;;  %v1440_v19 = vsub.s32 5, %v226_v2  ;;  %v1442_v20 = vsub.s32 7, %v226_v2  ;;  %v1444_v21 = vsub.s32 4, %v226_v2 }
  0x13   : > { %v216_v8 = vmul.f32 8.0, %v215_v5  ;;  %v1432_v9 = vrot.slane %v1426_v6, %v1428_v7  ;;  %v221_v15 = vmul.f32 8.0, %v220_v11  ;;  %v1446_v22 = vsub.s32 6, %v226_v2 }
  0x14   : > { %v1452_v26 = vcvt.s32.f32 %v227_v13 }
  0x15   : > { %v1297_v12 = vadd.f32 -0.5, %v216_v8  ;;  %v1448_v23 = vadd.f32 -0.5, %v221_v15 }
  0x17   : > { %v218_v16 = vmax.f32 %v1297_v12, 0.0  ;;  %v223_v27 = vmax.f32 %v1448_v23, 0.0 }
  0x19   : > { %v219_v24 = vmin.f32 %v218_v16, 15.0 }
  0x1b   : > { %v238_v28 = vrot.slane %v219_v24, %v1434_v14  ;;  %v246_v29 = vrot.slane %v219_v24, %v1436_v17  ;;  %v234_v30 = vrot.slane %v219_v24, %v1428_v7  ;;  %v242_v31 = vrot.slane %v219_v24, %v1438_v18 }
  0x1c   : > { %v254_v32 = vrot.slane %v219_v24, %v1440_v19  ;;  %v262_v33 = vrot.slane %v219_v24, %v1442_v20  ;;  %v250_v34 = vrot.slane %v219_v24, %v1444_v21  ;;  %v1463_v35 = vrot.slane %v219_v24, %v1446_v22  ;;  %v1477_v24 = vld [vmem:[%s1421_s17] sm:$0xff]  }
  0x1d   : > { %v272_v36 = vsub.f32 %v1450_v25, %v238_v28  ;;  %v280_v37 = vsub.f32 %v1452_v26, %v238_v28  ;;  %v274_v38 = vsub.f32 %v1450_v25, %v246_v29  ;;  %v282_v39 = vsub.f32 %v1452_v26, %v246_v29 }
  0x1e   : > { %v271_v40 = vsub.f32 %v1450_v25, %v234_v30  ;;  %v279_v41 = vsub.f32 %v1452_v26, %v234_v30  ;;  %v273_v42 = vsub.f32 %v1450_v25, %v242_v31  ;;  %v281_v43 = vsub.f32 %v1452_v26, %v242_v31 }
  0x1f   : > { %v288_v44 = vand.u32 2147483647, %v272_v36  ;;  %v296_v45 = vand.u32 2147483647, %v280_v37  ;;  %v290_v46 = vand.u32 2147483647, %v274_v38  ;;  %v276_v47 = vsub.f32 %v1450_v25, %v254_v32 }
  0x20   : > { %v298_v48 = vand.u32 2147483647, %v282_v39  ;;  %v287_v49 = vand.u32 2147483647, %v271_v40  ;;  %v295_v50 = vand.u32 2147483647, %v279_v41  ;;  %v284_v51 = vsub.f32 %v1452_v26, %v254_v32 }
  0x21   : > { %v304_v52 = vsub.f32 1.0, %v288_v44  ;;  %v312_v53 = vsub.f32 1.0, %v296_v45  ;;  %v306_v54 = vsub.f32 1.0, %v290_v46  ;;  %v289_v55 = vand.u32 2147483647, %v273_v42 }
  0x22   : > { %v314_v56 = vsub.f32 1.0, %v298_v48  ;;  %v303_v57 = vsub.f32 1.0, %v287_v49  ;;  %v311_v58 = vsub.f32 1.0, %v295_v50  ;;  %v297_v59 = vand.u32 2147483647, %v281_v43 }
  0x23   : > { %v320_v60 = vmax.f32 %v304_v52, 0.0  ;;  %v328_v61 = vmax.f32 %v312_v53, 0.0  ;;  %v322_v62 = vmax.f32 %v306_v54, 0.0  ;;  %v305_v63 = vsub.f32 1.0, %v289_v55 }
  0x24   : > { %v330_v0 = vmax.f32 %v314_v56, 0.0  ;;  %v319_v2 = vmax.f32 %v303_v57, 0.0  ;;  %v327_v3 = vmax.f32 %v311_v58, 0.0  ;;  %v313_v4 = vsub.f32 1.0, %v297_v59  ;;  %v1350_v57 = vld [vmem:[%s1421_s17 + $0x8] sm:$0xff]  }
  0x25   : > { %v449_v5 = vpack.c.bf16 %v328_v61, %v320_v60  ;;  %v321_v8 = vmax.f32 %v305_v63, 0.0  ;;  %v292_v10 = vand.u32 2147483647, %v276_v47  ;;  %v300_v11 = vand.u32 2147483647, %v284_v51  ;;  %v1352_v61 = vld [vmem:[%s1421_s17 + $0x18] sm:$0xff]  }
  0x26   : > { %v451_v12 = vpack.c.bf16 %v330_v0, %v322_v62  ;;  %v448_v13 = vpack.c.bf16 %v327_v3, %v319_v2  ;;  %v329_v15 = vmax.f32 %v313_v4, 0.0  ;;  %v278_v16 = vsub.f32 %v1450_v25, %v262_v33 }
  0x27   : > { %503 = vmatprep.subr.bf16.mxu0 %v449_v5  ;;  %v308_v28 = vsub.f32 1.0, %v292_v10  ;;  %v316_v29 = vsub.f32 1.0, %v300_v11  ;;  %v286_v30 = vsub.f32 %v1452_v26, %v262_v33  ;;  %v275_v31 = vsub.f32 %v1450_v25, %v250_v34 }
  0x28   : > { %576 = vmatprep.subr.bf16.mxu1 %v451_v12  ;;  %504 = vmatpush1.bf16.msra.mxu0 %v448_v13  ;;  %v450_v32 = vpack.c.bf16 %v329_v15, %v321_v8  ;;  %v294_v36 = vand.u32 2147483647, %v278_v16  ;;  %v283_v37 = vsub.f32 %v1452_v26, %v250_v34  ;;  %v277_v38 = vsub.f32 %v1450_v25, %v1463_v35 }
  0x29   : > { %v324_v39 = vmax.f32 %v308_v28, 0.0  ;;  %v332_v40 = vmax.f32 %v316_v29, 0.0  ;;  %v302_v41 = vand.u32 2147483647, %v286_v30  ;;  %v291_v42 = vand.u32 2147483647, %v275_v31 }
  0x2a   : > { %577 = vmatpush1.bf16.msra.mxu1 %v450_v32  ;;  %v310_v43 = vsub.f32 1.0, %v294_v36  ;;  %v299_v44 = vand.u32 2147483647, %v283_v37  ;;  %v285_v33 = vsub.f32 %v1452_v26, %v1463_v35  ;;  %v293_v45 = vand.u32 2147483647, %v277_v38 }
  0x2b   : > { %1303 = vmatmul.mubr.msk.bf16.vlgmr.msra.gmra.mxu0 %vm476_vm0, %v1477_v24  ;;  %v453_v46 = vpack.c.bf16 %v332_v40, %v324_v39  ;;  %v318_v47 = vsub.f32 1.0, %v302_v41  ;;  %v307_v34 = vsub.f32 1.0, %v291_v42  ;;  %v1490_v48 = vmin.f32 %v223_v27, 15.0 }
  0x2c   : > { %v326_v49 = vmax.f32 %v310_v43, 0.0  ;;  %v315_v50 = vsub.f32 1.0, %v299_v44  ;;  %v301_v51 = vand.u32 2147483647, %v285_v33  ;;  %v309_v52 = vsub.f32 1.0, %v293_v45  ;;  %531 = vmatprep.mubr.bf16.mxu0 %v1377_v1 }
  0x2d   : > { %1307 = vmatmul.mubr.msk.bf16.vlgmr.msra.gmra.mxu1 %vm476_vm0, %v1477_v24  ;;  %649 = vmatprep.subr.bf16.mxu0 %v453_v46  ;;  %v334_v35 = vmax.f32 %v318_v47, 0.0  ;;  %v323_v53 = vmax.f32 %v307_v34, 0.0  ;;  %v339_v54 = vrot.slane %v1490_v48, %v1428_v7  ;;  %v1351_v7 = vld [vmem:[%s1421_s17 + $0x10] sm:$0xff]   ;;  %v1378_v62 = vmov 0.0  }
  0x2e   : > { %v331_v55 = vmax.f32 %v315_v50, 0.0  ;;  %v317_v23 = vsub.f32 1.0, %v301_v51  ;;  %v325_v27 = vmax.f32 %v309_v52, 0.0  ;;  %604 = vmatprep.mubr.bf16.mxu1 %v1377_v1  ;;  %1175 = vst [vmem:[%s1533_s24] sm:$0xf] %v1378_v62  ;;  %v347_v63 = vrot.slane %v1490_v48, %v1438_v18 }
  0x2f   : > { %v455_v56 = vpack.c.bf16 %v334_v35, %v326_v49  ;;  %v376_v0 = vsub.f32 %v1450_v25, %v339_v54  ;;  %v351_v2 = vrot.slane %v1490_v48, %v1436_v17  ;;  %v384_v4 = vsub.f32 %v1452_v26, %v339_v54 }
  0x30   : > { %v452_v58 = vpack.c.bf16 %v331_v55, %v323_v53  ;;  %v333_v59 = vmax.f32 %v317_v23, 0.0  ;;  %v378_v3 = vsub.f32 %v1450_v25, %v347_v63  ;;  %v355_v5 = vrot.slane %v1490_v48, %v1444_v21 }
  0x31   : > { %722 = vmatprep.subr.bf16.mxu1 %v455_v56  ;;  %v392_v8 = vand.u32 2147483647, %v376_v0  ;;  %v379_v11 = vsub.f32 %v1450_v25, %v351_v2  ;;  %v386_v12 = vsub.f32 %v1452_v26, %v347_v63  ;;  %v387_v15 = vsub.f32 %v1452_v26, %v351_v2 }
  0x32   : > { %650 = vmatpush1.bf16.msra.mxu0 %v452_v58  ;;  %v454_v60 = vpack.c.bf16 %v333_v59, %v325_v27  ;;  %v363_v16 = vrot.slane %v1490_v48, %v1446_v22  ;;  %v394_v28 = vand.u32 2147483647, %v378_v3  ;;  %v400_v29 = vand.u32 2147483647, %v384_v4 }
  0x33   : > { %1304 = vmatmul.mubr.msk.bf16.gmra.mxu0 %vm476_vm0, %v1350_v57  ;;  %v380_v30 = vsub.f32 %v1450_v25, %v355_v5  ;;  %v367_v31 = vrot.slane %v1490_v48, %v1442_v20  ;;  %v408_v32 = vsub.f32 1.0, %v392_v8  ;;  %v1561_v37 = vrot.slane %v1426_v6, %v1434_v14 }
  0x34   : > { %723 = vmatpush1.bf16.msra.mxu1 %v454_v60  ;;  %541 = vmatprep.mubr.bf16.mxu0 %v1377_v1  ;;  %v395_v38 = vand.u32 2147483647, %v379_v11  ;;  %v402_v39 = vand.u32 2147483647, %v386_v12  ;;  %v1565_v41 = vrot.slane %v1426_v6, %v1436_v17  ;;  %v403_v42 = vand.u32 2147483647, %v387_v15 }
  0x35   : > { %1308 = vmatmul.mubr.msk.bf16.gmra.mxu1 %vm476_vm0, %v1350_v57  ;;  %v382_v43 = vsub.f32 %v1450_v25, %v363_v16  ;;  %v410_v33 = vsub.f32 1.0, %v394_v28  ;;  %v416_v45 = vsub.f32 1.0, %v400_v29  ;;  %v396_v46 = vand.u32 2147483647, %v380_v30 }
  0x36   : > { %614 = vmatprep.mubr.bf16.mxu1 %v1377_v1  ;;  %v383_v47 = vsub.f32 %v1450_v25, %v367_v31  ;;  %v1570_v34 = vmax.f32 %v408_v32, 0.0  ;;  %v411_v50 = vsub.f32 1.0, %v395_v38  ;;  %v418_v51 = vsub.f32 1.0, %v402_v39 }
  0x37   : > { %v419_v53 = vsub.f32 1.0, %v403_v42  ;;  %v398_v54 = vand.u32 2147483647, %v382_v43  ;;  %v391_v23 = vsub.f32 %v1452_v26, %v367_v31  ;;  %v1576_v27 = vmax.f32 %v410_v33, 0.0 }
  0x38   : > { %v412_v56 = vsub.f32 1.0, %v396_v46  ;;  %v1582_v58 = vrot.slane %v1426_v6, %v1438_v18  ;;  %v1586_v0 = vmax.f32 %v411_v50, 0.0 }
  0x39   : > { %v1592_v4 = vmax.f32 %v419_v53, 0.0  ;;  %v407_v8 = vand.u32 2147483647, %v391_v23 }
  0x3a   : > { %v1596_v12 = vmax.f32 %v412_v56, 0.0 }
  0x3b   : > { %1305 = vmatmul.mubr.msk.bf16.gmra.mxu0 %vm476_vm0, %v1351_v7  ;;  %v423_v33 = vsub.f32 1.0, %v407_v8 }
  0x3c   : > { %551 = vmatprep.mubr.bf16.mxu0 %v1377_v1 }
  0x3d   : > { %1309 = vmatmul.mubr.msk.bf16.gmra.mxu1 %vm476_vm0, %v1351_v7 }
  0x3e   : > { %624 = vmatprep.mubr.bf16.mxu1 %v1377_v1 }
  0x43   : > { %1306 = vmatmul.mubr.msk.bf16.gmra.mxu0 %vm476_vm0, %v1352_v61 }
  0x44   : > { %667 = vmatprep.mubr.bf16.mxu0 %v1377_v1 }
  0x45   : > { %1310 = vmatmul.mubr.msk.bf16.gmra.mxu1 %vm476_vm0, %v1352_v61 }
  0x46   : > { %740 = vmatprep.mubr.bf16.mxu1 %v1377_v1 }
  0x4b   : > { %1311 = vmatmul.mubr.msk.bf16.vlgmr.msra.gmra.mxu0 %vm476_vm0, %v1477_v24 }
  0x4c   : > { %677 = vmatprep.mubr.bf16.mxu0 %v1377_v1 }
  0x4d   : > { %1315 = vmatmul.mubr.msk.bf16.vlgmr.msra.gmra.mxu1 %vm476_vm0, %v1477_v24  ;;  %v359_v24 = vrot.slane %v1490_v48, %v1440_v19 }
  0x4e   : > { %750 = vmatprep.mubr.bf16.mxu1 %v1377_v1 }
  0x4f   : > { %v381_v44 = vsub.f32 %v1450_v25, %v359_v24  ;;  %v389_v49 = vsub.f32 %v1452_v26, %v359_v24 }
  0x51   : > { %v397_v55 = vand.u32 2147483647, %v381_v44  ;;  %v405_v62 = vand.u32 2147483647, %v389_v49 }
  0x53   : > { %1312 = vmatmul.mubr.msk.bf16.gmra.mxu0 %vm476_vm0, %v1350_v57  ;;  %v413_v18 = vsub.f32 1.0, %v397_v55  ;;  %v421_v30 = vsub.f32 1.0, %v405_v62 }
  0x54   : > { %687 = vmatprep.mubr.bf16.mxu0 %v1377_v1 }
  0x55   : > { %1316 = vmatmul.mubr.msk.bf16.gmra.mxu1 %vm476_vm0, %v1350_v57  ;;  %v399_v57 = vand.u32 2147483647, %v383_v47  ;;  %v1605_v44 = vmax.f32 %v413_v18, 0.0 }
  0x56   : > { %760 = vmatprep.mubr.bf16.mxu1 %v1377_v1 }
  0x5b   : > { %1313 = vmatmul.mubr.msk.bf16.gmra.mxu0 %vm476_vm0, %v1351_v7 }
  0x5c   : > { %697 = vmatprep.mubr.bf16.mxu0 %v1377_v1 }
  0x5d   : > { %1317 = vmatmul.mubr.msk.bf16.gmra.mxu1 %vm476_vm0, %v1351_v7 }
  0x5e   : > { %770 = vmatprep.mubr.bf16.mxu1 %v1377_v1  ;;  %v343_v1 = vrot.slane %v1490_v48, %v1434_v14  ;;  %v388_v14 = vsub.f32 %v1452_v26, %v355_v5  ;;  %v390_v48 = vsub.f32 %v1452_v26, %v363_v16  ;;  %v414_v5 = vsub.f32 1.0, %v398_v54 }
  0x60   : > { %v377_v10 = vsub.f32 %v1450_v25, %v343_v1  ;;  %v385_v13 = vsub.f32 %v1452_v26, %v343_v1  ;;  %v1578_v25 = vmax.f32 %v416_v45, 0.0  ;;  %v404_v7 = vand.u32 2147483647, %v388_v14 }
  0x61   : > { %v1588_v26 = vmax.f32 %v418_v51, 0.0  ;;  %v1603_v43 = vmax.f32 %v414_v5, 0.0 }
  0x62   : > { %v393_v36 = vand.u32 2147483647, %v377_v10  ;;  %v401_v40 = vand.u32 2147483647, %v385_v13  ;;  %v415_v13 = vsub.f32 1.0, %v399_v57  ;;  %v420_v28 = vsub.f32 1.0, %v404_v7 }
  0x63   : > { %1314 = vmatmul.mubr.msk.bf16.gmra.mxu0 %vm476_vm0, %v1352_v61  ;;  %v1618_v57 = vrot.slane %v1426_v6, %v1444_v21  ;;  %v1628_v7 = vmax.f32 %v423_v33, 0.0 }
  0x64   : > { %v409_v17 = vsub.f32 1.0, %v393_v36  ;;  %v417_v52 = vsub.f32 1.0, %v401_v40  ;;  %v1610_v50 = vmax.f32 %v420_v28, 0.0 }
  0x65   : > { %1318 = vmatmul.mubr.msk.bf16.gmra.mxu1 %vm476_vm0, %v1352_v61  ;;  %v406_v61 = vand.u32 2147483647, %v390_v48 }
  0x66   : > { %v1584_v63 = vmax.f32 %v409_v17, 0.0  ;;  %v1590_v1 = vmax.f32 %v417_v52, 0.0  ;;  %v1608_v17 = vmax.f32 %v415_v13, 0.0  ;;  %v1614_v52 = vmax.f32 %v421_v30, 0.0 }
  0x67   : > { %v422_v29 = vsub.f32 1.0, %v406_v61 }
  0x69   : > { %v1612_v51 = vmax.f32 %v422_v29, 0.0 }
  0xeb   : > { %v523_v35 = vpop.f32.mrf.mxu0 }
  0xec   : > { %v781_v10 = vmul.f32 %v523_v35, %v1570_v34 }
  0xed   : > { %v596_v59 = vpop.f32.mrf.mxu1  ;;  %v525_v60 = vpop.f32.mrf.mxu0 }
  0xee   : > { %v783_v15 = vmul.f32 %v596_v59, %v1576_v27  ;;  %v782_v31 = vmul.f32 %v525_v60, %v1584_v63  ;;  %v1622_v59 = vrot.slane %v1426_v6, %v1446_v22  ;;  %v1626_v60 = vrot.slane %v1426_v6, %v1440_v19 }
  0xef   : > { %v598_v2 = vpop.f32.mrf.mxu1  ;;  %v527_v3 = vpop.f32.mrf.mxu0 }
  0xf0   : > { %v789_v11 = vmul.f32 %v527_v3, %v1578_v25  ;;  %v784_v39 = vmul.f32 %v598_v2, %v1586_v0 }
  0xf1   : > { %v600_v16 = vpop.f32.mrf.mxu1  ;;  %v529_v24 = vpop.f32.mrf.mxu0 }
  0xf2   : > { %v845_v32 = vadd.f32 %v789_v11, %v781_v10  ;;  %v791_v36 = vmul.f32 %v600_v16, %v1588_v26  ;;  %v790_v38 = vmul.f32 %v529_v24, %v1590_v1 }
  0xf3   : > { %v602_v40 = vpop.f32.mrf.mxu1  ;;  %v533_v42 = vpop.f32.mrf.mxu0 }
  0xf4   : > { %v846_v45 = vrot.slane %v845_v32, 4  ;;  %v859_v46 = vadd.f32 %v791_v36, %v783_v15  ;;  %v852_v47 = vadd.f32 %v790_v38, %v782_v31  ;;  %v792_v14 = vmul.f32 %v602_v40, %v1592_v4 }
  0xf5   : > { %v606_v48 = vpop.f32.mrf.mxu1  ;;  %v535_v49 = vpop.f32.mrf.mxu0  ;;  %v797_v5 = vmul.f32 %v533_v42, %v1570_v34 }
  0xf6   : > { %v847_v35 = vadd.f32 %v846_v45, %v845_v32  ;;  %v860_v53 = vrot.slane %v859_v46, 4  ;;  %v853_v54 = vrot.slane %v852_v47, 4  ;;  %v866_v55 = vadd.f32 %v792_v14, %v784_v39 }
  0xf7   : > { %v608_v23 = vpop.f32.mrf.mxu1  ;;  %v537_v56 = vpop.f32.mrf.mxu0  ;;  %v799_v18 = vmul.f32 %v606_v48, %v1576_v27  ;;  %v798_v21 = vmul.f32 %v535_v49, %v1584_v63 }
  0xf8   : > { %v848_v61 = vrot.slane %v847_v35, 2  ;;  %v861_v62 = vadd.f32 %v860_v53, %v859_v46  ;;  %v854_v2 = vadd.f32 %v853_v54, %v852_v47  ;;  %v867_v3 = vrot.slane %v866_v55, 4 }
  0xf9   : > { %v805_v8 = vmul.f32 %v537_v56, %v1578_v25  ;;  %v610_v22 = vpop.f32.mrf.mxu1  ;;  %v539_v10 = vpop.f32.mrf.mxu0  ;;  %v800_v16 = vmul.f32 %v608_v23, %v1586_v0 }
  0xfa   : > { %v849_v11 = vadd.f32 %v848_v61, %v847_v35  ;;  %v862_v13 = vrot.slane %v861_v62, 2  ;;  %v855_v19 = vrot.slane %v854_v2, 2  ;;  %v868_v15 = vadd.f32 %v867_v3, %v866_v55 }
  0xfb   : > { %v901_v24 = vadd.f32 %v805_v8, %v797_v5  ;;  %v807_v28 = vmul.f32 %v610_v22, %v1588_v26  ;;  %v806_v29 = vmul.f32 %v539_v10, %v1590_v1  ;;  %v612_v30 = vpop.f32.mrf.mxu1  ;;  %v543_v31 = vpop.f32.mrf.mxu0 }
  0xfc   : > { %v850_v32 = vrot.slane %v849_v11, 1  ;;  %v863_v36 = vadd.f32 %v862_v13, %v861_v62  ;;  %v856_v38 = vadd.f32 %v855_v19, %v854_v2  ;;  %v869_v39 = vrot.slane %v868_v15, 2 }
  0xfd   : > { %v902_v40 = vrot.slane %v901_v24, 4  ;;  %v915_v42 = vadd.f32 %v807_v28, %v799_v18  ;;  %v908_v33 = vadd.f32 %v806_v29, %v798_v21  ;;  %v808_v45 = vmul.f32 %v612_v30, %v1592_v4  ;;  %v616_v46 = vpop.f32.mrf.mxu1  ;;  %v545_v47 = vpop.f32.mrf.mxu0 }
  0xfe   : > { %v851_v14 = vadd.f32 %v850_v32, %v849_v11  ;;  %v864_v48 = vrot.slane %v863_v36, 1  ;;  %v857_v49 = vrot.slane %v856_v38, 1  ;;  %v870_v35 = vadd.f32 %v869_v39, %v868_v15 }
  0xff   : > { %v903_v53 = vadd.f32 %v902_v40, %v901_v24  ;;  %v916_v54 = vrot.slane %v915_v42, 4  ;;  %v909_v55 = vrot.slane %v908_v33, 4  ;;  %v922_v23 = vadd.f32 %v808_v45, %v800_v16  ;;  %v618_v56 = vpop.f32.mrf.mxu1  ;;  %v547_v61 = vpop.f32.mrf.mxu0 }
 0x100   : > { %v1111_v62 = vmul.f32 %v1432_v9, %v851_v14  ;;  %v865_v2 = vadd.f32 %v864_v48, %v863_v36  ;;  %v858_v3 = vadd.f32 %v857_v49, %v856_v38  ;;  %v871_v5 = vrot.slane %v870_v35, 1 }
 0x101   : > { %v904_v18 = vrot.slane %v903_v53, 2  ;;  %v917_v21 = vadd.f32 %v916_v54, %v915_v42  ;;  %v910_v8 = vadd.f32 %v909_v55, %v908_v33  ;;  %v923_v22 = vrot.slane %v922_v23, 4  ;;  %v620_v10 = vpop.f32.mrf.mxu1  ;;  %v549_v11 = vpop.f32.mrf.mxu0 }
 0x102   : > { %v1113_v13 = vmul.f32 %v1582_v58, %v865_v2  ;;  %v1112_v19 = vmul.f32 %v1561_v37, %v858_v3  ;;  %v872_v15 = vadd.f32 %v871_v5, %v870_v35  ;;  %v813_v16 = vmul.f32 %v543_v31, %v1570_v34 }
 0x103   : > { %v905_v24 = vadd.f32 %v904_v18, %v903_v53  ;;  %v918_v28 = vrot.slane %v917_v21, 2  ;;  %v911_v29 = vrot.slane %v910_v8, 2  ;;  %v924_v30 = vadd.f32 %v923_v22, %v922_v23  ;;  %v622_v32 = vpop.f32.mrf.mxu1  ;;  %v553_v36 = vpop.f32.mrf.mxu0 }
 0x104   : > { %v1143_v38 = vadd.f32 %v1112_v19, %v1111_v62  ;;  %v1114_v39 = vmul.f32 %v1565_v41, %v872_v15  ;;  %v815_v40 = vmul.f32 %v616_v46, %v1576_v27  ;;  %v814_v42 = vmul.f32 %v545_v47, %v1584_v63 }
 0x105   : > { %v906_v33 = vrot.slane %v905_v24, 1  ;;  %v919_v45 = vadd.f32 %v918_v28, %v917_v21  ;;  %v912_v14 = vadd.f32 %v911_v29, %v910_v8  ;;  %v925_v48 = vrot.slane %v924_v30, 2  ;;  %v626_v49 = vpop.f32.mrf.mxu1  ;;  %v555_v35 = vpop.f32.mrf.mxu0 }
 0x106   : > { %v1147_v31 = vadd.f32 %v1114_v39, %v1113_v13  ;;  %v816_v53 = vmul.f32 %v618_v56, %v1586_v0  ;;  %v821_v54 = vmul.f32 %v547_v61, %v1578_v25  ;;  %v823_v55 = vmul.f32 %v620_v10, %v1588_v26 }
 0x107   : > { %v907_v23 = vadd.f32 %v906_v33, %v905_v24  ;;  %v920_v62 = vrot.slane %v919_v45, 1  ;;  %v913_v2 = vrot.slane %v912_v14, 1  ;;  %v926_v3 = vadd.f32 %v925_v48, %v924_v30  ;;  %v628_v46 = vpop.f32.mrf.mxu1  ;;  %v557_v5 = vpop.f32.mrf.mxu0 }
 0x108   : > { %v1648_v47 = vadd.f32 %v1147_v31, %v1143_v38  ;;  %v957_v18 = vadd.f32 %v821_v54, %v813_v16  ;;  %v971_v21 = vadd.f32 %v823_v55, %v815_v40  ;;  %v822_v8 = vmul.f32 %v549_v11, %v1590_v1 }
 0x109   : > { %v1119_v22 = vmul.f32 %v1432_v9, %v907_v23  ;;  %v921_v13 = vadd.f32 %v920_v62, %v919_v45  ;;  %v914_v56 = vadd.f32 %v913_v2, %v912_v14  ;;  %v927_v19 = vrot.slane %v926_v3, 1  ;;  %v630_v61 = vpop.f32.mrf.mxu1  ;;  %v559_v15 = vpop.f32.mrf.mxu0 }
 0x10a   : > { %v958_v10 = vrot.slane %v957_v18, 4  ;;  %v972_v24 = vrot.slane %v971_v21, 4  ;;  %v964_v28 = vadd.f32 %v822_v8, %v814_v42  ;;  %v824_v29 = vmul.f32 %v622_v32, %v1592_v4 }
 0x10b   : > { %v1121_v30 = vmul.f32 %v1582_v58, %v921_v13  ;;  %v1120_v38 = vmul.f32 %v1561_v37, %v914_v56  ;;  %v928_v16 = vadd.f32 %v927_v19, %v926_v3  ;;  %v829_v39 = vmul.f32 %v553_v36, %v1570_v34  ;;  %v632_v11 = vpop.f32.mrf.mxu1  ;;  %v1656_v40 = vpop.f32.mrf.mxu0 }
 0x10c   : > { %v959_v33 = vadd.f32 %v958_v10, %v957_v18  ;;  %v973_v45 = vadd.f32 %v972_v24, %v971_v21  ;;  %v965_v14 = vrot.slane %v964_v28, 4  ;;  %v978_v48 = vadd.f32 %v824_v29, %v816_v53 }
 0x10d   : > { %v1144_v31 = vadd.f32 %v1120_v38, %v1119_v22  ;;  %v1122_v54 = vmul.f32 %v1565_v41, %v928_v16  ;;  %v831_v42 = vmul.f32 %v626_v49, %v1576_v27  ;;  %v830_v32 = vmul.f32 %v555_v35, %v1584_v63  ;;  %v742_v55 = vpop.f32.mrf.mxu1  ;;  %v1661_v23 = vpop.f32.mrf.mxu0 }
 0x10e   : > { %v960_v62 = vrot.slane %v959_v33, 2  ;;  %v974_v2 = vrot.slane %v973_v45, 2  ;;  %v966_v34 = vadd.f32 %v965_v14, %v964_v28  ;;  %v979_v36 = vrot.slane %v978_v48, 4 }
 0x10f   : > { %v1148_v3 = vadd.f32 %v1122_v54, %v1121_v30  ;;  %v832_v18 = vmul.f32 %v628_v46, %v1586_v0  ;;  %v837_v21 = vmul.f32 %v557_v5, %v1578_v25  ;;  %v839_v53 = vmul.f32 %v630_v61, %v1588_v26  ;;  %v744_v8 = vpop.f32.mrf.mxu1  ;;  %v673_v22 = vpop.f32.mrf.mxu0 }
 0x110   : > { %v961_v13 = vadd.f32 %v960_v62, %v959_v33  ;;  %v975_v27 = vadd.f32 %v974_v2, %v973_v45  ;;  %v967_v49 = vrot.slane %v966_v34, 2  ;;  %v980_v63 = vadd.f32 %v979_v36, %v978_v48 }
 0x111   : > { %v1666_v35 = vadd.f32 %v1148_v3, %v1144_v31  ;;  %v1013_v56 = vadd.f32 %v837_v21, %v829_v39  ;;  %v1027_v19 = vadd.f32 %v839_v53, %v831_v42  ;;  %v838_v10 = vmul.f32 %v559_v15, %v1590_v1  ;;  %v746_v24 = vpop.f32.mrf.mxu1  ;;  %v675_v28 = vpop.f32.mrf.mxu0 }
 0x112   : > { %v962_v29 = vrot.slane %v961_v13, 1  ;;  %v976_v0 = vrot.slane %v975_v27, 1  ;;  %v968_v46 = vadd.f32 %v967_v49, %v966_v34  ;;  %v981_v25 = vrot.slane %v980_v63, 2 }
 0x113   : > { %v1014_v5 = vrot.slane %v1013_v56, 4  ;;  %v1028_v26 = vrot.slane %v1027_v19, 4  ;;  %v1020_v61 = vadd.f32 %v838_v10, %v830_v32  ;;  %v840_v30 = vmul.f32 %v632_v11, %v1592_v4  ;;  %v748_v38 = vpop.f32.mrf.mxu1  ;;  %v1670_v16 = vpop.f32.mrf.mxu0 }
 0x114   : > { %v963_v33 = vadd.f32 %v962_v29, %v961_v13  ;;  %v977_v45 = vadd.f32 %v976_v0, %v975_v27  ;;  %v969_v39 = vrot.slane %v968_v46, 1  ;;  %v982_v14 = vadd.f32 %v981_v25, %v980_v63 }
 0x115   : > { %v1015_v48 = vadd.f32 %v1014_v5, %v1013_v56  ;;  %v1029_v1 = vadd.f32 %v1028_v26, %v1027_v19  ;;  %v1021_v15 = vrot.slane %v1020_v61, 4  ;;  %v1034_v31 = vadd.f32 %v840_v30, %v832_v18  ;;  %v752_v54 = vpop.f32.mrf.mxu1  ;;  %v1672_v42 = vpop.f32.mrf.mxu0 }
 0x116   : > { %v1127_v62 = vmul.f32 %v1432_v9, %v963_v33  ;;  %v1129_v32 = vmul.f32 %v1582_v58, %v977_v45  ;;  %v970_v2 = vadd.f32 %v969_v39, %v968_v46  ;;  %v983_v4 = vrot.slane %v982_v14, 1 }
 0x117   : > { %v1016_v11 = vrot.slane %v1015_v48, 2  ;;  %v1030_v34 = vrot.slane %v1029_v1, 2  ;;  %v1022_v36 = vadd.f32 %v1021_v15, %v1020_v61  ;;  %v1035_v3 = vrot.slane %v1034_v31, 4  ;;  %v754_v21 = vpop.f32.mrf.mxu1  ;;  %v683_v53 = vpop.f32.mrf.mxu0 }
 0x118   : > { %v1128_v13 = vmul.f32 %v1561_v37, %v970_v2  ;;  %v984_v27 = vadd.f32 %v983_v4, %v982_v14  ;;  %v785_v18 = vmul.f32 %v1656_v40, %v1596_v12  ;;  %v787_v49 = vmul.f32 %v742_v55, %v1603_v43 }
 0x119   : > { %v1017_v63 = vadd.f32 %v1016_v11, %v1015_v48  ;;  %v1031_v56 = vadd.f32 %v1030_v34, %v1029_v1  ;;  %v1023_v19 = vrot.slane %v1022_v36, 2  ;;  %v1036_v10 = vadd.f32 %v1035_v3, %v1034_v31  ;;  %v756_v29 = vpop.f32.mrf.mxu1  ;;  %v685_v0 = vpop.f32.mrf.mxu0 }
 0x11a   : > { %v1145_v46 = vadd.f32 %v1128_v13, %v1127_v62  ;;  %v1130_v25 = vmul.f32 %v1565_v41, %v984_v27  ;;  %v786_v5 = vmul.f32 %v1661_v23, %v1605_v44  ;;  %v788_v26 = vmul.f32 %v744_v8, %v1608_v17 }
 0x11b   : > { %v1018_v61 = vrot.slane %v1017_v63, 1  ;;  %v1032_v30 = vrot.slane %v1031_v56, 1  ;;  %v1024_v33 = vadd.f32 %v1023_v19, %v1022_v36  ;;  %v1037_v40 = vrot.slane %v1036_v10, 2  ;;  %v758_v48 = vpop.f32.mrf.mxu1  ;;  %v1687_v1 = vpop.f32.mrf.mxu0 }
 0x11c   : > { %v1149_v45 = vadd.f32 %v1130_v25, %v1129_v32  ;;  %v793_v55 = vmul.f32 %v673_v22, %v1610_v50  ;;  %v795_v39 = vmul.f32 %v746_v24, %v1612_v51  ;;  %v794_v14 = vmul.f32 %v675_v28, %v1614_v52 }
 0x11d   : > { %v1019_v15 = vadd.f32 %v1018_v61, %v1017_v63  ;;  %v1033_v31 = vadd.f32 %v1032_v30, %v1031_v56  ;;  %v1025_v62 = vrot.slane %v1024_v33, 1  ;;  %v1038_v23 = vadd.f32 %v1037_v40, %v1036_v10  ;;  %v1694_v27 = vpop.f32.mrf.mxu1  ;;  %v1696_v63 = vpop.f32.mrf.mxu0 }
 0x11e   : > { %v1689_v2 = vadd.f32 %v1149_v45, %v1145_v46  ;;  %v873_v8 = vadd.f32 %v793_v55, %v785_v18  ;;  %v887_v4 = vadd.f32 %v795_v39, %v787_v49  ;;  %v880_v11 = vadd.f32 %v794_v14, %v786_v5 }
 0x11f   : > { %v1135_v32 = vmul.f32 %v1432_v9, %v1019_v15  ;;  %v1137_v22 = vmul.f32 %v1582_v58, %v1033_v31  ;;  %v1026_v34 = vadd.f32 %v1025_v62, %v1024_v33  ;;  %v1039_v24 = vrot.slane %v1038_v23, 1  ;;  %v1706_v45 = vpop.f32.mrf.mxu1 }
 0x120   : > { %v874_v36 = vrot.slane %v873_v8, 4  ;;  %v888_v28 = vrot.slane %v887_v4, 4  ;;  %v881_v3 = vrot.slane %v880_v11, 4  ;;  %v796_v13 = vmul.f32 %v748_v38, %v1628_v7 }
 0x121   : > { %v1136_v56 = vmul.f32 %v1561_v37, %v1026_v34  ;;  %v1040_v18 = vadd.f32 %v1039_v24, %v1038_v23  ;;  %v801_v49 = vmul.f32 %v1670_v16, %v1596_v12  ;;  %v803_v9 = vmul.f32 %v752_v54, %v1603_v43  ;;  %v693_v16 = vpop.f32.mrf.mxu0 }
 0x122   : > { %v875_v58 = vadd.f32 %v874_v36, %v873_v8  ;;  %v889_v19 = vadd.f32 %v888_v28, %v887_v4  ;;  %v882_v10 = vadd.f32 %v881_v3, %v880_v11  ;;  %v894_v46 = vadd.f32 %v796_v13, %v788_v26 }
 0x123   : > { %v1146_v25 = vadd.f32 %v1136_v56, %v1135_v32  ;;  %v1138_v5 = vmul.f32 %v1565_v41, %v1040_v18  ;;  %v802_v38 = vmul.f32 %v1672_v42, %v1605_v44  ;;  %v804_v61 = vmul.f32 %v754_v21, %v1608_v17  ;;  %v695_v34 = vpop.f32.mrf.mxu0 }
 0x124   : > { %v876_v30 = vrot.slane %v875_v58, 2  ;;  %v890_v37 = vrot.slane %v889_v19, 2  ;;  %v883_v33 = vrot.slane %v882_v10, 2  ;;  %v895_v40 = vrot.slane %v894_v46, 4 }
 0x125   : > { %v1150_v54 = vadd.f32 %v1138_v5, %v1137_v22  ;;  %v809_v55 = vmul.f32 %v683_v53, %v1610_v50  ;;  %v811_v26 = vmul.f32 %v756_v29, %v1612_v51  ;;  %v810_v39 = vmul.f32 %v685_v0, %v1614_v52  ;;  %v766_v22 = vpop.f32.mrf.mxu1  ;;  %v699_v5 = vpop.f32.mrf.mxu0 }
 0x126   : > { %v877_v41 = vadd.f32 %v876_v30, %v875_v58  ;;  %v891_v14 = vadd.f32 %v890_v37, %v889_v19  ;;  %v884_v15 = vadd.f32 %v883_v33, %v882_v10  ;;  %v896_v42 = vadd.f32 %v895_v40, %v894_v46 }
 0x127   : > { %v1711_v31 = vadd.f32 %v1150_v54, %v1146_v25  ;;  %v929_v21 = vadd.f32 %v809_v55, %v801_v49  ;;  %v943_v62 = vadd.f32 %v811_v26, %v803_v9  ;;  %v936_v23 = vadd.f32 %v810_v39, %v802_v38  ;;  %v768_v25 = vpop.f32.mrf.mxu1 }
 0x128   : > { %v878_v8 = vrot.slane %v877_v41, 1  ;;  %v892_v4 = vrot.slane %v891_v14, 1  ;;  %v885_v11 = vrot.slane %v884_v15, 1  ;;  %v897_v32 = vrot.slane %v896_v42, 2 }
 0x129   : > { %v930_v53 = vrot.slane %v929_v21, 4  ;;  %v944_v24 = vrot.slane %v943_v62, 4  ;;  %v937_v29 = vrot.slane %v936_v23, 4  ;;  %v812_v0 = vmul.f32 %v758_v48, %v1628_v7 }
 0x12a   : > { %v879_v36 = vadd.f32 %v878_v8, %v877_v41  ;;  %v893_v28 = vadd.f32 %v892_v4, %v891_v14  ;;  %v886_v3 = vadd.f32 %v885_v11, %v884_v15  ;;  %v898_v13 = vadd.f32 %v897_v32, %v896_v42  ;;  %v772_v42 = vpop.f32.mrf.mxu1 }
 0x12b   : > { %v931_v56 = vadd.f32 %v930_v53, %v929_v21  ;;  %v945_v18 = vadd.f32 %v944_v24, %v943_v62  ;;  %v938_v49 = vadd.f32 %v937_v29, %v936_v23  ;;  %v950_v9 = vadd.f32 %v812_v0, %v804_v61  ;;  %v701_v21 = vpop.f32.mrf.mxu0 }
 0x12c   : > { %v1115_v58 = vmul.f32 %v1618_v57, %v879_v36  ;;  %v1116_v19 = vmul.f32 %v1626_v60, %v886_v3  ;;  %v899_v10 = vrot.slane %v898_v13, 1  ;;  %v1718_v46 = vrot.slane %v1426_v6, %v1442_v20  ;;  %v774_v3 = vpop.f32.mrf.mxu1 }
 0x12d   : > { %v932_v48 = vrot.slane %v931_v56, 2  ;;  %v946_v38 = vrot.slane %v945_v18, 2  ;;  %v939_v30 = vrot.slane %v938_v49, 2  ;;  %v951_v37 = vrot.slane %v950_v9, 4 }
 0x12e   : > { %v1117_v33 = vmul.f32 %v1622_v59, %v893_v28  ;;  %v1151_v40 = vadd.f32 %v1116_v19, %v1115_v58  ;;  %v900_v54 = vadd.f32 %v899_v10, %v898_v13  ;;  %v817_v61 = vmul.f32 %v1687_v1, %v1596_v12  ;;  %v703_v13 = vpop.f32.mrf.mxu0 }
 0x12f   : > { %v933_v55 = vadd.f32 %v932_v48, %v931_v56  ;;  %v947_v26 = vadd.f32 %v946_v38, %v945_v18  ;;  %v940_v39 = vadd.f32 %v939_v30, %v938_v49  ;;  %v952_v41 = vadd.f32 %v951_v37, %v950_v9 }
 0x130   : > { %v1118_v6 = vmul.f32 %v1718_v46, %v900_v54  ;;  %v819_v20 = vmul.f32 %v1694_v27, %v1603_v43  ;;  %v818_v14 = vmul.f32 %v1696_v63, %v1605_v44  ;;  %v825_v15 = vmul.f32 %v693_v16, %v1610_v50 }
 0x131   : > { %v934_v62 = vrot.slane %v933_v55, 1  ;;  %v948_v23 = vrot.slane %v947_v26, 1  ;;  %v941_v8 = vrot.slane %v940_v39, 1  ;;  %v953_v1 = vrot.slane %v952_v41, 2 }
 0x132   : > { %v1155_v4 = vadd.f32 %v1118_v6, %v1117_v33  ;;  %v985_v11 = vadd.f32 %v825_v15, %v817_v61  ;;  %v827_v32 = vmul.f32 %v766_v22, %v1612_v51  ;;  %v826_v53 = vmul.f32 %v695_v34, %v1614_v52  ;;  %v776_v61 = vpop.f32.mrf.mxu1 }
 0x133   : > { %v935_v24 = vadd.f32 %v934_v62, %v933_v55  ;;  %v949_v29 = vadd.f32 %v948_v23, %v947_v26  ;;  %v942_v27 = vadd.f32 %v941_v8, %v940_v39  ;;  %v954_v0 = vadd.f32 %v953_v1, %v952_v41  ;;  %v705_v55 = vpop.f32.mrf.mxu0 }
 0x134   : > { %v1163_v36 = vadd.f32 %v1155_v4, %v1151_v40  ;;  %v986_v63 = vrot.slane %v985_v11, 4  ;;  %v999_v28 = vadd.f32 %v827_v32, %v819_v20  ;;  %v992_v16 = vadd.f32 %v826_v53, %v818_v14 }
 0x135   : > { %v1123_v56 = vmul.f32 %v1618_v57, %v935_v24  ;;  %v1124_v18 = vmul.f32 %v1626_v60, %v942_v27  ;;  %v955_v49 = vrot.slane %v954_v0, 1  ;;  %v820_v22 = vmul.f32 %v1706_v45, %v1608_v17 }
 0x136   : > { %v1167_v34 = vadd.f32 %v1163_v36, %v1648_v47  ;;  %v987_v9 = vadd.f32 %v986_v63, %v985_v11  ;;  %v1000_v58 = vrot.slane %v999_v28, 4  ;;  %v993_v19 = vrot.slane %v992_v16, 4 }
 0x137   : > { %v1125_v10 = vmul.f32 %v1622_v59, %v949_v29  ;;  %v1152_v48 = vadd.f32 %v1124_v18, %v1123_v56  ;;  %v956_v38 = vadd.f32 %v955_v49, %v954_v0  ;;  %v828_v30 = vmul.f32 %v768_v25, %v1628_v7 }
 0x138   : > { %v988_v37 = vrot.slane %v987_v9, 2  ;;  %v1001_v33 = vadd.f32 %v1000_v58, %v999_v28  ;;  %v994_v40 = vadd.f32 %v993_v19, %v992_v16  ;;  %v833_v54 = vmul.f32 %v699_v5, %v1596_v12 }
 0x139   : > { %v1126_v45 = vmul.f32 %v1718_v46, %v956_v38  ;;  %v1006_v26 = vadd.f32 %v828_v30, %v820_v22  ;;  %v835_v47 = vmul.f32 %v772_v42, %v1603_v43  ;;  %v834_v39 = vmul.f32 %v701_v21, %v1605_v44 }
 0x13a   : > { %v989_v41 = vadd.f32 %v988_v37, %v987_v9  ;;  %v1002_v6 = vrot.slane %v1001_v33, 2  ;;  %v995_v20 = vrot.slane %v994_v40, 2  ;;  %v841_v14 = vmul.f32 %v703_v13, %v1610_v50 }
 0x13b   : > { %v1156_v25 = vadd.f32 %v1126_v45, %v1125_v10  ;;  %v1007_v15 = vrot.slane %v1006_v26, 4  ;;  %v843_v62 = vmul.f32 %v776_v61, %v1612_v51  ;;  %v842_v12 = vmul.f32 %v705_v55, %v1614_v52  ;;  %v778_v51 = vpop.f32.mrf.mxu1 }
 0x13c   : > { %v990_v5 = vrot.slane %v989_v41, 1  ;;  %v1003_v23 = vadd.f32 %v1002_v6, %v1001_v33  ;;  %v996_v8 = vadd.f32 %v995_v20, %v994_v40  ;;  %v1041_v1 = vadd.f32 %v841_v14, %v833_v54 }
 0x13d   : > { %v1164_v4 = vadd.f32 %v1156_v25, %v1152_v48  ;;  %v1008_v11 = vadd.f32 %v1007_v15, %v1006_v26  ;;  %v1055_v43 = vadd.f32 %v843_v62, %v835_v47  ;;  %v1048_v42 = vadd.f32 %v842_v12, %v834_v39 }
 0x13e   : > { %v1004_v44 = vrot.slane %v1003_v23, 1  ;;  %v997_v21 = vrot.slane %v996_v8, 1  ;;  %v1042_v32 = vrot.slane %v1041_v1, 4  ;;  %v991_v27 = vadd.f32 %v990_v5, %v989_v41 }
 0x13f   : > { %v1168_v50 = vadd.f32 %v1164_v4, %v1666_v35  ;;  %v1009_v53 = vrot.slane %v1008_v11, 2  ;;  %v1056_v24 = vrot.slane %v1055_v43, 4  ;;  %v1049_v29 = vrot.slane %v1048_v42, 4 }
 0x140   : > { %v998_v52 = vadd.f32 %v997_v21, %v996_v8  ;;  %v836_v0 = vmul.f32 %v774_v3, %v1608_v17  ;;  %v1043_v36 = vadd.f32 %v1042_v32, %v1041_v1  ;;  %v1005_v56 = vadd.f32 %v1004_v44, %v1003_v23 }
 0x141   : > { %v1181_v63 = vrot.slane %v1168_v50, 7  ;;  %v1010_v28 = vadd.f32 %v1009_v53, %v1008_v11  ;;  %v1057_v16 = vadd.f32 %v1056_v24, %v1055_v43  ;;  %v1050_v13 = vadd.f32 %v1049_v29, %v1048_v42  ;;  %v1176_v42 = vld [vmem:[%s1533_s24] sm:$0xf] }
 0x142   : > { %v1132_v18 = vmul.f32 %v1626_v60, %v998_v52  ;;  %v1044_v49 = vrot.slane %v1043_v36, 2  ;;  %v844_v22 = vmul.f32 %v778_v51, %v1628_v7  ;;  %v1131_v17 = vmul.f32 %v1618_v57, %v991_v27 }
 0x143   : > { %v1183_v35 = vsel %vm1182_vm1, %v1181_v63, %v1167_v34  ;;  %v1011_v9 = vrot.slane %v1010_v28, 1  ;;  %v1058_v58 = vrot.slane %v1057_v16, 2  ;;  %v1051_v19 = vrot.slane %v1050_v13, 2 }
 0x144   : > { %v1045_v10 = vadd.f32 %v1044_v49, %v1043_v36  ;;  %v1062_v48 = vadd.f32 %v844_v22, %v836_v0  ;;  %v1133_v33 = vmul.f32 %v1622_v59, %v1005_v56  ;;  %v1153_v40 = vadd.f32 %v1132_v18, %v1131_v17 }
 0x145   : > { %v1012_v3 = vadd.f32 %v1011_v9, %v1010_v28  ;;  %v1052_v38 = vadd.f32 %v1051_v19, %v1050_v13  ;;  %v1059_v30 = vadd.f32 %v1058_v58, %v1057_v16 }
 0x146   : > { %v1063_v37 = vrot.slane %v1062_v48, 4  ;;  %v1046_v7 = vrot.slane %v1045_v10, 1 }
 0x147   : > { %v1134_v54 = vmul.f32 %v1718_v46, %v1012_v3  ;;  %v1053_v61 = vrot.slane %v1052_v38, 1  ;;  %v1060_v45 = vrot.slane %v1059_v30, 1 }
 0x148   : > { %v1064_v55 = vadd.f32 %v1063_v37, %v1062_v48  ;;  %v1047_v41 = vadd.f32 %v1046_v7, %v1045_v10 }
 0x149   : > { %v1157_v34 = vadd.f32 %v1134_v54, %v1133_v33  ;;  %v1054_v26 = vadd.f32 %v1053_v61, %v1052_v38  ;;  %v1061_v14 = vadd.f32 %v1060_v45, %v1059_v30 }
 0x14a   : > { %v1065_v47 = vrot.slane %v1064_v55, 2  ;;  %v1139_v12 = vmul.f32 %v1618_v57, %v1047_v41 }
 0x14b   : > { %v1165_v39 = vadd.f32 %v1157_v34, %v1153_v40  ;;  %v1140_v25 = vmul.f32 %v1626_v60, %v1054_v26  ;;  %v1141_v8 = vmul.f32 %v1622_v59, %v1061_v14 }
 0x14c   : > { %v1066_v6 = vadd.f32 %v1065_v47, %v1064_v55 }
 0x14d   : > { %v1169_v20 = vadd.f32 %v1165_v39, %v1689_v2  ;;  %v1154_v1 = vadd.f32 %v1140_v25, %v1139_v12 }
 0x14e   : > { %v1067_v15 = vrot.slane %v1066_v6, 1 }
 0x14f   : > { %v1184_v62 = vrot.slane %v1169_v20, 6 }
 0x150   : > { %v1068_v5 = vadd.f32 %v1067_v15, %v1066_v6 }
 0x151   : > { %v1186_v23 = vsel %vm1185_vm2, %v1184_v62, %v1183_v35 }
 0x152   : > { %v1142_v4 = vmul.f32 %v1718_v46, %v1068_v5 }
 0x154   : > { %v1158_v11 = vadd.f32 %v1142_v4, %v1141_v8 }
 0x156   : > { %v1166_v43 = vadd.f32 %v1158_v11, %v1154_v1 }
 0x158   : > { %v1170_v2 = vadd.f32 %v1166_v43, %v1711_v31 }
 0x15a   : > { %v1187_v44 = vrot.slane %v1170_v2, 5 }
 0x15c   : > { %v1189_v60 = vsel %vm1188_vm3, %v1187_v44, %v1186_v23 }
 0x15d   : > { %v1191_v21 = vadd.f32 %v1189_v60, %v1176_v42 }
 0x15f   : > { %1192 = vst [vmem:[%s1533_s24] sm:$0xf] %v1191_v21 }
 0x160 PF: > { %s12_s11 = sadd.s32 1, %s1375_s11   ;;  %s1773_s9 = smov %s1371_s10 }
 0x161   : > { %p9_p5 = scmp.ge.s32.totalorder %s12_s11, 4   ;;  %s1774_s10 = smov %s1776_s12 }
 0x163   :  { %11 = sbr.rel (!%p9_p5) target bundleno = 2 (0x2), region = 65 }

</bundles_post_ra>
